<compile_context>
chip_gen: v5e
topology: v5e:2x2
jax: 0.10.0
libtpu: 0.0.40
codegen_flags: <defaults>
</compile_context>

<pallas_src>
import functools
import math

import jax
import jax.numpy as jnp
from jax import lax
from jax.experimental import pallas as pl
from jax.experimental.pallas import tpu as pltpu

LN_EPS = 1e-5
BN_EPS = 1e-5


def block_kernel(x_ref, vec_ref, w1_ref, w2_ref, o_ref):
    """One (TM, H) row-tile of linear2(relu(linear1'(layernorm(x)))) + x."""
    x = x_ref[...].astype(jnp.float32)            # (TM, H) residual + LN input
    h_dim = x.shape[-1]

    # Packed resident parameter vectors: rows = [ln_g, ln_b, b1', b2].
    ln_g = vec_ref[0:1, :]
    ln_b = vec_ref[1:2, :]
    b1 = vec_ref[2:3, :]
    b2 = vec_ref[3:4, :]

    # ---- LayerNorm, one-pass statistics (independent XLU reductions) -------
    inv_h = jnp.float32(1.0 / h_dim)
    s1 = jnp.sum(x, axis=-1, keepdims=True)
    s2 = jnp.sum(x * x, axis=-1, keepdims=True)
    mean = s1 * inv_h
    var = jnp.maximum(s2 * inv_h - mean * mean, 0.0)
    ln = (x - mean) * lax.rsqrt(var + LN_EPS) * ln_g + ln_b

    # ---- Linear1 with inference BatchNorm folded in (bf16 -> MXU) ----------
    h1 = jnp.dot(ln.astype(jnp.bfloat16), w1_ref[...],
                 preferred_element_type=jnp.float32)
    r = jnp.maximum(h1 + b1, 0.0)                 # bias + ReLU (dropout = id)

    # ---- Linear2 (bf16 -> MXU) + residual -----------------------------------
    out = jnp.dot(r.astype(jnp.bfloat16), w2_ref[...],
                  preferred_element_type=jnp.float32)
    o_ref[...] = (out + b2 + x).astype(o_ref.dtype)


def _round_up(v, m):
    return ((v + m - 1) // m) * m


def _vmem_limit_bytes():
    """~75% of per-core VMEM; per-generation constant fallback."""
    cap = None
    try:
        cap = pltpu.get_tpu_info().vmem_capacity_bytes
    except Exception:
        cap = None
    if not cap:
        kind = ""
        try:
            kind = jax.devices()[0].device_kind.lower()
        except Exception:
            pass
        cap = (64 << 20) if "7" in kind else (128 << 20)   # v7x: 64 MiB, else 128 MiB
    return int(cap * 3 // 4)


def _pick_tm(n, h, vmem_limit):
    """Row-tile size: >=~2 MiB streamed tile, VMEM-budgeted, >=2 grid steps."""
    # Resident footprint: two bf16 (H,H) weights (single-buffered) + packed vectors.
    resident = 2 * h * h * 2 + 8 * h * 4
    avail = max(vmem_limit - resident, vmem_limit // 8)
    # Per-row f32 bytes: double-buffered x + out tiles plus ~5 live temporaries
    # (x, ln, h1, r, out) inside the kernel body.
    per_row = 10 * h * 4
    tm_budget = max(8, (avail // per_row) // 8 * 8)
    # Target: streamed f32 tile >= ~2 MiB so HBM DMA hides the ~0.35us/step overhead.
    tm_desired = max(512, _round_up(max(1, (2 << 20) // (4 * h)), 256))
    tm_cap = min(tm_desired, tm_budget)
    if n <= 8:
        return 8
    # At least 2 grid steps so both v7x TensorCores get work; balance padding.
    steps = max(2, pl.cdiv(n, tm_cap))
    tm = min(tm_cap, _round_up(pl.cdiv(n, steps), 8))
    return max(8, tm)


def block_forward(x, kp, *, single_buffer_resident=True):
    """x: (N, H) f32.  kp: folded params {vec:(4,H) f32, w1/w2:(H,H) bf16}."""
    n, h = x.shape
    vmem_limit = _vmem_limit_bytes()
    tm = _pick_tm(n, h, vmem_limit)
    n_pad = pl.cdiv(n, tm) * tm
    xp = x if n_pad == n else jnp.pad(x, ((0, n_pad - n), (0, 0)))

    row_spec = pl.BlockSpec((tm, h), lambda i: (i, 0))          # pipelined tile
    if single_buffer_resident:
        # Constant index_map -> never re-DMA'd; single buffer halves resident VMEM.
        res = lambda shape: pl.BlockSpec(shape, lambda i: (0, 0),
                                         pipeline_mode=pl.Buffered(1))
    else:
        res = lambda shape: pl.BlockSpec(shape, lambda i: (0, 0))

    cost = pl.CostEstimate(
        flops=4 * n_pad * h * h,                  # two (TM,H)x(H,H) matmuls
        transcendentals=n_pad,                    # one rsqrt per row
        bytes_accessed=2 * n_pad * h * 4          # x in + out
                       + 2 * h * h * 2            # bf16 weights
                       + 4 * h * 4)               # packed (4, H) vectors

    out = pl.pallas_call(
        block_kernel,
        out_shape=jax.ShapeDtypeStruct((n_pad, h), x.dtype),
        grid=(n_pad // tm,),
        in_specs=[
            row_spec,          # x tile (streamed, double-buffered)
            res((4, h)),       # packed [ln_g, ln_b, b1', b2] (f32, resident)
            res((h, h)),       # w1' (bf16, BN folded, layout: in x out)
            res((h, h)),       # w2  (bf16, layout: in x out)
        ],
        out_specs=row_spec,
        compiler_params=pltpu.CompilerParams(
            dimension_semantics=("parallel",),    # shard row tiles over TCs (v7x)
            vmem_limit_bytes=vmem_limit),
        cost_estimate=cost,
    )(xp, kp["vec"], kp["w1"], kp["w2"])

    return out if n_pad == n else out[:n]


def init_params(key, hidden):
    """Raw f32 parameters mirroring the PyTorch module (weights pre-transposed)."""
    ks = jax.random.split(key, 10)
    scale = 1.0 / math.sqrt(hidden)
    u = lambda k, shape, lo, hi: jax.random.uniform(k, shape, jnp.float32, lo, hi)
    return {
        "ln_g": u(ks[0], (1, hidden), 0.5, 1.5),
        "ln_b": u(ks[1], (1, hidden), -0.1, 0.1),
        "w1": u(ks[2], (hidden, hidden), -scale, scale),   # W1^T: (in, out)
        "b1": u(ks[3], (1, hidden), -scale, scale),
        "bn_g": u(ks[4], (1, hidden), 0.5, 1.5),
        "bn_b": u(ks[5], (1, hidden), -0.1, 0.1),
        "bn_m": u(ks[6], (1, hidden), -0.2, 0.2),
        "bn_v": u(ks[7], (1, hidden), 0.5, 1.5),
        "w2": u(ks[8], (hidden, hidden), -scale, scale),   # W2^T: (in, out)
        "b2": u(ks[9], (1, hidden), -scale, scale),
    }


def fold_params(p):
    """Fold inference BN into linear1, pack bias/scale vectors, cast weights bf16."""
    s = p["bn_g"] * lax.rsqrt(p["bn_v"] + BN_EPS)          # per-output-column scale
    w1f = p["w1"] * s                                      # columns = linear1 outputs
    b1f = (p["b1"] - p["bn_m"]) * s + p["bn_b"]
    vec = jnp.concatenate([p["ln_g"], p["ln_b"], b1f, p["b2"]],
                          axis=0).astype(jnp.float32)      # (4, H)
    return {
        "vec": vec,
        "w1": w1f.astype(jnp.bfloat16),
        "w2": p["w2"].astype(jnp.bfloat16),
    }


def reference_forward(x, p):
    """Pure f32 reference with the original (unfolded) module semantics."""
    mean = jnp.mean(x, axis=-1, keepdims=True)
    var = jnp.mean((x - mean) ** 2, axis=-1, keepdims=True)
    ln = (x - mean) / jnp.sqrt(var + LN_EPS) * p["ln_g"] + p["ln_b"]
    h = ln @ p["w1"] + p["b1"]
    bn = (h - p["bn_m"]) / jnp.sqrt(p["bn_v"] + BN_EPS) * p["bn_g"] + p["bn_b"]
    r = jnp.maximum(bn, 0.0)
    return r @ p["w2"] + p["b2"] + x


if __name__ == "__main__":
    batch, hidden = 64, 128          # hidden multiple of 128 -> lane-dense tiles
    key = jax.random.PRNGKey(0)
    k_x, k_p = jax.random.split(key)
    x = jax.random.normal(k_x, (batch, hidden), jnp.float32)
    raw = init_params(k_p, hidden)
    kp = fold_params(raw)

    # batch=64 -> tm=32, 2-step parallel grid (exercises pipelining + both v7x TCs).
    try:
        fwd = jax.jit(functools.partial(block_forward, single_buffer_resident=True))
        out = jax.block_until_ready(fwd(x, kp))
    except Exception:
        # Fallback: default double-buffered resident blocks if pipeline_mode is rejected.
        fwd = jax.jit(functools.partial(block_forward, single_buffer_resident=False))
        out = jax.block_until_ready(fwd(x, kp))

    ref = reference_forward(x, raw)
    assert out.shape == (batch, hidden)
    max_err = float(jnp.max(jnp.abs(out - ref)))
    assert jnp.allclose(out, ref, atol=3e-2, rtol=3e-2), (
        f"mismatch vs reference (max abs err {max_err})")
    print("KERNEL_OK")
</pallas_src>

<mosaic_0001>
module attributes {stable_mosaic.version = 11 : i64} {
  func.func @block_kernel(%arg0: i32, %arg1: memref<32x128xf32, #tpu.memory_space<vmem>>, %arg2: memref<4x128xf32, #tpu.memory_space<vmem>>, %arg3: memref<128x128xbf16, #tpu.memory_space<vmem>>, %arg4: memref<128x128xbf16, #tpu.memory_space<vmem>>, %arg5: memref<32x128xf32, #tpu.memory_space<vmem>>) attributes {dimension_semantics = [#tpu.dimension_semantics<parallel>], iteration_bounds = array<i64: 2>, scalar_prefetch = 0 : i64, scratch_operands = 0 : i64, tpu.core_type = #tpu.core_type<tc>, window_params = [{transform_indices = @transform_0, window_bounds = array<i64: 32, 128>}, {pipeline_mode = #tpu.pipeline_mode<synchronous>, transform_indices = @transform_1, window_bounds = array<i64: 4, 128>}, {pipeline_mode = #tpu.pipeline_mode<synchronous>, transform_indices = @transform_2, window_bounds = array<i64: 128, 128>}, {pipeline_mode = #tpu.pipeline_mode<synchronous>, transform_indices = @transform_3, window_bounds = array<i64: 128, 128>}, {transform_indices = @transform_4, window_bounds = array<i64: 32, 128>}]} {
    %c0 = arith.constant 0 : index
    %c0_0 = arith.constant 0 : index
    %0 = vector.load %arg1[%c0, %c0_0] : memref<32x128xf32, #tpu.memory_space<vmem>>, vector<32x128xf32>
    %c0_1 = arith.constant 0 : index
    %c0_2 = arith.constant 0 : index
    %1 = vector.load %arg2[%c0_1, %c0_2] : memref<4x128xf32, #tpu.memory_space<vmem>>, vector<1x128xf32>
    %c1 = arith.constant 1 : index
    %c0_3 = arith.constant 0 : index
    %2 = vector.load %arg2[%c1, %c0_3] : memref<4x128xf32, #tpu.memory_space<vmem>>, vector<1x128xf32>
    %c2 = arith.constant 2 : index
    %c0_4 = arith.constant 0 : index
    %3 = vector.load %arg2[%c2, %c0_4] : memref<4x128xf32, #tpu.memory_space<vmem>>, vector<1x128xf32>
    %c3 = arith.constant 3 : index
    %c0_5 = arith.constant 0 : index
    %4 = vector.load %arg2[%c3, %c0_5] : memref<4x128xf32, #tpu.memory_space<vmem>>, vector<1x128xf32>
    %cst = arith.constant dense<0.000000e+00> : vector<32xf32>
    %5 = vector.multi_reduction <add>, %0, %cst [1] : vector<32x128xf32> to vector<32xf32>
    %6 = vector.shape_cast %5 : vector<32xf32> to vector<32x1xf32>
    %7 = arith.mulf %0, %0 : vector<32x128xf32>
    %cst_6 = arith.constant dense<0.000000e+00> : vector<32xf32>
    %8 = vector.multi_reduction <add>, %7, %cst_6 [1] : vector<32x128xf32> to vector<32xf32>
    %9 = vector.shape_cast %8 : vector<32xf32> to vector<32x1xf32>
    %cst_7 = arith.constant 7.812500e-03 : f32
    %10 = vector.broadcast %cst_7 : f32 to vector<32x1xf32>
    %11 = arith.mulf %6, %10 : vector<32x1xf32>
    %cst_8 = arith.constant 7.812500e-03 : f32
    %12 = vector.broadcast %cst_8 : f32 to vector<32x1xf32>
    %13 = arith.mulf %9, %12 : vector<32x1xf32>
    %14 = arith.mulf %11, %11 : vector<32x1xf32>
    %15 = arith.subf %13, %14 : vector<32x1xf32>
    %cst_9 = arith.constant 0.000000e+00 : f32
    %16 = vector.broadcast %cst_9 : f32 to vector<32x1xf32>
    %17 = arith.maximumf %15, %16 : vector<32x1xf32>
    %18 = vector.broadcast %11 : vector<32x1xf32> to vector<32x128xf32>
    %19 = arith.subf %0, %18 : vector<32x128xf32>
    %cst_10 = arith.constant 9.99999974E-6 : f32
    %20 = vector.broadcast %cst_10 : f32 to vector<32x1xf32>
    %21 = arith.addf %17, %20 : vector<32x1xf32>
    %22 = math.rsqrt %21 : vector<32x1xf32>
    %23 = vector.broadcast %22 : vector<32x1xf32> to vector<32x128xf32>
    %24 = arith.mulf %19, %23 : vector<32x128xf32>
    %25 = vector.broadcast %1 : vector<1x128xf32> to vector<32x128xf32>
    %26 = arith.mulf %24, %25 : vector<32x128xf32>
    %27 = vector.broadcast %2 : vector<1x128xf32> to vector<32x128xf32>
    %28 = arith.addf %26, %27 : vector<32x128xf32>
    %29 = arith.truncf %28 : vector<32x128xf32> to vector<32x128xbf16>
    %c0_11 = arith.constant 0 : index
    %c0_12 = arith.constant 0 : index
    %30 = vector.load %arg3[%c0_11, %c0_12] : memref<128x128xbf16, #tpu.memory_space<vmem>>, vector<128x128xbf16>
    %cst_13 = arith.constant dense<0.000000e+00> : vector<32x128xf32>
    %31 = tpu.matmul %29, %30, %cst_13 {dimension_numbers = #tpu.dot_dimension_numbers<[1], [0], [0], [1], [0, 0, 1, 1], [], []>} : vector<32x128xbf16>, vector<128x128xbf16>, vector<32x128xf32> -> vector<32x128xf32>
    %32 = vector.broadcast %3 : vector<1x128xf32> to vector<32x128xf32>
    %33 = arith.addf %31, %32 : vector<32x128xf32>
    %cst_14 = arith.constant 0.000000e+00 : f32
    %34 = vector.broadcast %cst_14 : f32 to vector<32x128xf32>
    %35 = arith.maximumf %33, %34 : vector<32x128xf32>
    %36 = arith.truncf %35 : vector<32x128xf32> to vector<32x128xbf16>
    %c0_15 = arith.constant 0 : index
    %c0_16 = arith.constant 0 : index
    %37 = vector.load %arg4[%c0_15, %c0_16] : memref<128x128xbf16, #tpu.memory_space<vmem>>, vector<128x128xbf16>
    %cst_17 = arith.constant dense<0.000000e+00> : vector<32x128xf32>
    %38 = tpu.matmul %36, %37, %cst_17 {dimension_numbers = #tpu.dot_dimension_numbers<[1], [0], [0], [1], [0, 0, 1, 1], [], []>} : vector<32x128xbf16>, vector<128x128xbf16>, vector<32x128xf32> -> vector<32x128xf32>
    %39 = vector.broadcast %4 : vector<1x128xf32> to vector<32x128xf32>
    %40 = arith.addf %38, %39 : vector<32x128xf32>
    %41 = arith.addf %40, %0 : vector<32x128xf32>
    %c0_18 = arith.constant 0 : index
    %c0_19 = arith.constant 0 : index
    %42 = vector.load %arg5[%c0_18, %c0_19] : memref<32x128xf32, #tpu.memory_space<vmem>>, vector<32x128xf32>
    tpu.vector_store %arg5[%c0_18, %c0_19], %41 {strides = array<i32>} : memref<32x128xf32, #tpu.memory_space<vmem>>, vector<32x128xf32>,
    return
  }
  func.func @transform_0(%arg0: i32) -> (i32, i32) {
    %c0_i32 = arith.constant 0 : i32
    %c0_i32_0 = arith.constant 0 : i32
    return %arg0, %c0_i32 : i32, i32
  }
  func.func @transform_1(%arg0: i32) -> (i32, i32) {
    %c0_i32 = arith.constant 0 : i32
    %c0_i32_0 = arith.constant 0 : i32
    %c0_i32_1 = arith.constant 0 : i32
    return %c0_i32, %c0_i32_0 : i32, i32
  }
  func.func @transform_2(%arg0: i32) -> (i32, i32) {
    %c0_i32 = arith.constant 0 : i32
    %c0_i32_0 = arith.constant 0 : i32
    %c0_i32_1 = arith.constant 0 : i32
    return %c0_i32, %c0_i32_0 : i32, i32
  }
  func.func @transform_3(%arg0: i32) -> (i32, i32) {
    %c0_i32 = arith.constant 0 : i32
    %c0_i32_0 = arith.constant 0 : i32
    %c0_i32_1 = arith.constant 0 : i32
    return %c0_i32, %c0_i32_0 : i32, i32
  }
  func.func @transform_4(%arg0: i32) -> (i32, i32) {
    %c0_i32 = arith.constant 0 : i32
    %c0_i32_0 = arith.constant 0 : i32
    return %arg0, %c0_i32 : i32, i32
  }
}

module attributes {stable_mosaic.version = 11 : i64} {
  func.func @block_kernel(%arg0: i32, %arg1: memref<32x128xf32, #tpu.memory_space<vmem>>, %arg2: memref<4x128xf32, #tpu.memory_space<vmem>>, %arg3: memref<128x128xbf16, #tpu.memory_space<vmem>>, %arg4: memref<128x128xbf16, #tpu.memory_space<vmem>>, %arg5: memref<32x128xf32, #tpu.memory_space<vmem>>) attributes {dimension_semantics = [#tpu.dimension_semantics<parallel>], iteration_bounds = array<i64: 2>, scalar_prefetch = 0 : i64, scratch_operands = 0 : i64, tpu.core_type = #tpu.core_type<tc>, window_params = [{transform_indices = @transform_0, window_bounds = array<i64: 32, 128>}, {pipeline_mode = #tpu.pipeline_mode<synchronous>, transform_indices = @transform_1, window_bounds = array<i64: 4, 128>}, {pipeline_mode = #tpu.pipeline_mode<synchronous>, transform_indices = @transform_2, window_bounds = array<i64: 128, 128>}, {pipeline_mode = #tpu.pipeline_mode<synchronous>, transform_indices = @transform_3, window_bounds = array<i64: 128, 128>}, {transform_indices = @transform_4, window_bounds = array<i64: 32, 128>}]} {
    %c0 = arith.constant 0 : index
    %c0_0 = arith.constant 0 : index
    %0 = vector.load %arg1[%c0, %c0_0] : memref<32x128xf32, #tpu.memory_space<vmem>>, vector<32x128xf32>
    %c0_1 = arith.constant 0 : index
    %c0_2 = arith.constant 0 : index
    %1 = vector.load %arg2[%c0_1, %c0_2] : memref<4x128xf32, #tpu.memory_space<vmem>>, vector<1x128xf32>
    %c1 = arith.constant 1 : index
    %c0_3 = arith.constant 0 : index
    %2 = vector.load %arg2[%c1, %c0_3] : memref<4x128xf32, #tpu.memory_space<vmem>>, vector<1x128xf32>
    %c2 = arith.constant 2 : index
    %c0_4 = arith.constant 0 : index
    %3 = vector.load %arg2[%c2, %c0_4] : memref<4x128xf32, #tpu.memory_space<vmem>>, vector<1x128xf32>
    %c3 = arith.constant 3 : index
    %c0_5 = arith.constant 0 : index
    %4 = vector.load %arg2[%c3, %c0_5] : memref<4x128xf32, #tpu.memory_space<vmem>>, vector<1x128xf32>
    %cst = arith.constant dense<0.000000e+00> : vector<32xf32>
    %5 = vector.multi_reduction <add>, %0, %cst [1] : vector<32x128xf32> to vector<32xf32>
    %6 = vector.shape_cast %5 : vector<32xf32> to vector<32x1xf32>
    %7 = arith.mulf %0, %0 : vector<32x128xf32>
    %cst_6 = arith.constant dense<0.000000e+00> : vector<32xf32>
    %8 = vector.multi_reduction <add>, %7, %cst_6 [1] : vector<32x128xf32> to vector<32xf32>
    %9 = vector.shape_cast %8 : vector<32xf32> to vector<32x1xf32>
    %cst_7 = arith.constant 7.812500e-03 : f32
    %10 = vector.broadcast %cst_7 : f32 to vector<32x1xf32>
    %11 = arith.mulf %6, %10 : vector<32x1xf32>
    %cst_8 = arith.constant 7.812500e-03 : f32
    %12 = vector.broadcast %cst_8 : f32 to vector<32x1xf32>
    %13 = arith.mulf %9, %12 : vector<32x1xf32>
    %14 = arith.mulf %11, %11 : vector<32x1xf32>
    %15 = arith.subf %13, %14 : vector<32x1xf32>
    %cst_9 = arith.constant 0.000000e+00 : f32
    %16 = vector.broadcast %cst_9 : f32 to vector<32x1xf32>
    %17 = arith.maximumf %15, %16 : vector<32x1xf32>
    %18 = vector.broadcast %11 : vector<32x1xf32> to vector<32x128xf32>
    %19 = arith.subf %0, %18 : vector<32x128xf32>
    %cst_10 = arith.constant 9.99999974E-6 : f32
    %20 = vector.broadcast %cst_10 : f32 to vector<32x1xf32>
    %21 = arith.addf %17, %20 : vector<32x1xf32>
    %22 = math.rsqrt %21 : vector<32x1xf32>
    %23 = vector.broadcast %22 : vector<32x1xf32> to vector<32x128xf32>
    %24 = arith.mulf %19, %23 : vector<32x128xf32>
    %25 = vector.broadcast %1 : vector<1x128xf32> to vector<32x128xf32>
    %26 = arith.mulf %24, %25 : vector<32x128xf32>
    %27 = vector.broadcast %2 : vector<1x128xf32> to vector<32x128xf32>
    %28 = arith.addf %26, %27 : vector<32x128xf32>
    %29 = arith.truncf %28 : vector<32x128xf32> to vector<32x128xbf16>
    %c0_11 = arith.constant 0 : index
    %c0_12 = arith.constant 0 : index
    %30 = vector.load %arg3[%c0_11, %c0_12] : memref<128x128xbf16, #tpu.memory_space<vmem>>, vector<128x128xbf16>
    %cst_13 = arith.constant dense<0.000000e+00> : vector<32x128xf32>
    %31 = tpu.matmul %29, %30, %cst_13 {dimension_numbers = #tpu.dot_dimension_numbers<[1], [0], [0], [1], [0, 0, 1, 1], [], []>} : vector<32x128xbf16>, vector<128x128xbf16>, vector<32x128xf32> -> vector<32x128xf32>
    %32 = vector.broadcast %3 : vector<1x128xf32> to vector<32x128xf32>
    %33 = arith.addf %31, %32 : vector<32x128xf32>
    %cst_14 = arith.constant 0.000000e+00 : f32
    %34 = vector.broadcast %cst_14 : f32 to vector<32x128xf32>
    %35 = arith.maximumf %33, %34 : vector<32x128xf32>
    %36 = arith.truncf %35 : vector<32x128xf32> to vector<32x128xbf16>
    %c0_15 = arith.constant 0 : index
    %c0_16 = arith.constant 0 : index
    %37 = vector.load %arg4[%c0_15, %c0_16] : memref<128x128xbf16, #tpu.memory_space<vmem>>, vector<128x128xbf16>
    %cst_17 = arith.constant dense<0.000000e+00> : vector<32x128xf32>
    %38 = tpu.matmul %36, %37, %cst_17 {dimension_numbers = #tpu.dot_dimension_numbers<[1], [0], [0], [1], [0, 0, 1, 1], [], []>} : vector<32x128xbf16>, vector<128x128xbf16>, vector<32x128xf32> -> vector<32x128xf32>
    %39 = vector.broadcast %4 : vector<1x128xf32> to vector<32x128xf32>
    %40 = arith.addf %38, %39 : vector<32x128xf32>
    %41 = arith.addf %40, %0 : vector<32x128xf32>
    %c0_18 = arith.constant 0 : index
    %c0_19 = arith.constant 0 : index
    %42 = vector.load %arg5[%c0_18, %c0_19] : memref<32x128xf32, #tpu.memory_space<vmem>>, vector<32x128xf32>
    tpu.vector_store %arg5[%c0_18, %c0_19], %41 {strides = array<i32>} : memref<32x128xf32, #tpu.memory_space<vmem>>, vector<32x128xf32>,
    return
  }
  func.func @transform_0(%arg0: i32) -> (i32, i32) {
    %c0_i32 = arith.constant 0 : i32
    %c0_i32_0 = arith.constant 0 : i32
    return %arg0, %c0_i32 : i32, i32
  }
  func.func @transform_1(%arg0: i32) -> (i32, i32) {
    %c0_i32 = arith.constant 0 : i32
    %c0_i32_0 = arith.constant 0 : i32
    %c0_i32_1 = arith.constant 0 : i32
    return %c0_i32, %c0_i32_0 : i32, i32
  }
  func.func @transform_2(%arg0: i32) -> (i32, i32) {
    %c0_i32 = arith.constant 0 : i32
    %c0_i32_0 = arith.constant 0 : i32
    %c0_i32_1 = arith.constant 0 : i32
    return %c0_i32, %c0_i32_0 : i32, i32
  }
  func.func @transform_3(%arg0: i32) -> (i32, i32) {
    %c0_i32 = arith.constant 0 : i32
    %c0_i32_0 = arith.constant 0 : i32
    %c0_i32_1 = arith.constant 0 : i32
    return %c0_i32, %c0_i32_0 : i32, i32
  }
  func.func @transform_4(%arg0: i32) -> (i32, i32) {
    %c0_i32 = arith.constant 0 : i32
    %c0_i32_0 = arith.constant 0 : i32
    return %arg0, %c0_i32 : i32, i32
  }
}

</mosaic_0001>

<bundles_post_ra>
// kernel: block_forward.1
= control target key start
LH: loop header
LB: loop body
LE: loop exit
PB: predicated region body
PF: predicated region fallthrough
CT: control target
= control target key end

     0   :  { %9 = vsyncpa [#allocation3], 0  ;;  %s1335_s0 = inlined_call_operand.hbm [shape: f32[64,128], index: 0, kind: input, shape index: {}]   ;;  %s1336_s1 = inlined_call_operand.hbm [shape: f32[4,128], index: 1, kind: input, shape index: {}]   ;;  %s1337_s2 = inlined_call_operand.hbm [shape: bf16[128,128], index: 2, kind: input, shape index: {}]   ;;  %s1338_s3 = inlined_call_operand.hbm [shape: bf16[128,128], index: 3, kind: input, shape index: {}]   ;;  %s1339_s4 = inlined_call_operand.hbm [shape: f32[64,128], index: 4, kind: output, shape index: {}]  }
   0x1   :  { %11 = vsyncpa [#allocation3 + $0x1], 0 }
   0x2   :  { %12 = vsyncpa [#allocation6], 0 }
   0x3   :  { %13 = vsyncpa [#allocation9], 0 }
   0x4   :  { %14 = vsyncpa [#allocation4], 0 }
   0x5   :  { %16 = vsyncpa [#allocation4 + $0x1], 0  ;;  %s1123_s15 = smov 0   ;;  %s1125_s16 = smov 0  }
   0x6   :  { %s1127_s17 = smov 0   ;;  %s1129_s18 = smov 0  }
   0x7 LB: > { %s1144_s19 = sadd.s32 4294967295, %s1087_s18   ;;  %s680_s20 = sadd.s32 4294967294, %s1087_s18   ;;  %s1087_s18 = sphi %s1129_s18, %s1350_s18   ;;  %s1083_s17 = sphi %s1127_s17, %s1349_s17   ;;  %s1079_s16 = sphi %s1125_s16, %s1348_s16   ;;  %s1075_s15 = sphi %s1123_s15, %s1347_s15  }
   0x8   : > { %p42_p0 = scmp.ne.s32.totalorder %s1079_s16, %s1075_s15  ;;  %p43_p1 = scmp.eq.s32.totalorder %s1144_s19, 0 }
   0x9   : > { %p129_p2 = scmp.eq.s32.totalorder %s1144_s19, 1  ;;  %p135_p3 = scmp.eq.s32.totalorder %s680_s20, 1 }
   0xa   : > { %p1153_p4 = por %p43_p1, %p42_p0  ;;  %p681_p5 = scmp.ge.s32.totalorder %s1087_s18, 1 }
   0xb   : > { %p1158_p6 = por %p135_p3, %p42_p0  ;;  %p142_p7 = scmp.lt.s32.totalorder %s1087_s18, 3 }
   0xc   : > { %s154_s25 = sshll.u32 %s1336_s1, 4  ;;  %s1089_s27 = smov [#allocation5]   ;;  %s155_s25 = int_to_ptr.hbm [resolvable:$true] %s154_s25 }
   0xd   : > { %p1166_p8 = pnand %p681_p5, %p142_p7  ;;  %s156_s28 = sshll.u32 %s1089_s27, 4  ;;  %s157_s28 = int_to_ptr.vmem [resolvable:$true] %s156_s28 }
   0xe   : > { %s165_s5 = sshll.u32 %s1337_s2, 4  ;;  %s1090_s7 = smov [#allocation7]   ;;  %s166_s5 = int_to_ptr.hbm [resolvable:$true] %s165_s5 }
   0xf   : > { %p814_p10 = pneg %p1166_p8  ;;  %s167_s8 = sshll.u32 %s1090_s7, 4  ;;  %s168_s8 = int_to_ptr.vmem [resolvable:$true] %s167_s8 }
  0x10   : > { %s1091_s9 = smov 64   ;;  %s1092_s10 = smov 4  }
  0x11   : > { %p1178_p11 = pnand %p814_p10, %p43_p1  ;;  %s179_s13 = sshll.u32 %s1338_s3, 4  ;;  %s180_s13 = int_to_ptr.hbm [resolvable:$true] %s179_s13 }
  0x12   : > { %s1093_s14 = smov [#allocation8]   ;;  %s1192_s23 = sadd.s32 1, %s1087_s18  }
  0x13   : > { %817 = dma.hbm_to_vmem [thread:$0]  (!%p1178_p11), %s155_s25, 64, %s157_s28, [#allocation6]  }
  0x14   : > { %820 = dma.hbm_to_vmem [thread:$0]  (!%p1178_p11), %s166_s5, 1024, %s168_s8, [#allocation6], %s1091_s9, %s1091_s9, %s1092_s10  }
  0x15   : > { %s181_s20 = sshll.u32 %s1093_s14, 4  ;;  %s26_s24 = ssub.s32 %s1087_s18, %s1192_s23  ;;  %s182_s20 = int_to_ptr.vmem [resolvable:$true] %s181_s20 }
  0x16   : > { %823 = dma.hbm_to_vmem [thread:$0]  (!%p1178_p11), %s180_s13, 1024, %s182_s20, [#allocation9], %s1091_s9, %s1091_s9, %s1092_s10  }
  0x17   : > { %s29_s25 = sadd.s32 1, %s1083_s17  ;;  %p27_p12 = scmp.eq.s32.totalorder %s26_s24, 0 }
  0x18   : > { %p36_p13 = scmp.ne.s32.totalorder %s1083_s17, %s1079_s16  ;;  %p37_p0 = scmp.eq.s32.totalorder %s1087_s18, 0 }
  0x19   : > { %p835_p3 = scmp.lt.s32.totalorder %s1087_s18, 2  ;;  %s195_s29 = sand.u32 1, %s1083_s17  }
  0x1a   : > { %s1202_s27 = scalar_select %p27_p12, %s1083_s17, %s29_s25  }
  0x1b   : > { %p38_p5 = por %p37_p0, %p36_p13  ;;  %p1206_p7 = por %p129_p2, %p36_p13 }
  0x1c   : > { %s764_s30 = sshll.u32 %s1087_s18, 5  ;;  %s686_s5 = sshll.u32 %s195_s29, 5 }
  0x1d   : > { %s204_s8 = scalar_lea.hbm %s1335_s0, %s764_s30  ;;  %s199_s10 = scalar_lea.vmem [#allocation2], %s686_s5 }
  0x1e   : > { %s205_s9 = sshll.u32 %s204_s8, 4  ;;  %s207_s11 = sshll.u32 %s199_s10, 4  ;;  %s206_s9 = int_to_ptr.hbm [resolvable:$true] %s205_s9  ;;  %s208_s11 = int_to_ptr.vmem [resolvable:$true] %s207_s11 }
  0x1f   : > { %p1217_p10 = pnand %p835_p3, %p38_p5  ;;  %s196_s13 = scalar_lea.sflag [#allocation3], %s195_s29 }
  0x20   : > { %s983_s14 = sshra.s32 %s206_s9, 4  ;;  %s990_s30 = scalar_lea.hbm %s1335_s0, 64  ;;  %s984_s14 = int_to_ptr.hbm [resolvable:$true] %s983_s14 }
  0x21   : > { %s985_s20 = scalar_lea.hbm %s984_s14, 32  ;;  %p987_p11 = pneg %p1217_p10 }
  0x22   : > { %p986_p2 = scmp.ne.s32.totalorder %s984_s14, %s985_s20  ;;  %p991_p0 = scmp.lt.s32.totalorder %s984_s14, %s1335_s0 }
  0x23   : > { %p992_p3 = scmp.lt.s32.totalorder %s990_s30, %s985_s20 }
  0x24   : > { %p988_p12 = pnand %p987_p11, %p986_p2 }
  0x25   : > { %p993_p5 = por %p992_p3, %p991_p0 }
  0x26   : > { %p989_p13 = pneg %p988_p12 }
  0x28   : > { %p994_p9 = pnand %p993_p5, %p989_p13 }
  0x2a   : > { %997 = shalt.err (!%p994_p9)
}
  0x2b   : > { %s1094_s29 = smov 128   ;;  %s1095_s7 = smov 8  }
  0x2c   : > { %827 = dma.hbm_to_vmem [thread:$0]  (!%p1217_p10), %s206_s9, 512, %s208_s11, %s196_s13, %s1094_s29, %s1094_s29, %s1095_s7  }
  0x2d   : > { %219 = sbr.rel (%p1166_p8) target bundleno = 510 (0x1fe), region = 36  ;;  %s1234_s8 = sand.u32 (!%p1166_p8), 1, %s1079_s16  }
  0x2e   : > { %s690_s10 = sshll.u32 (!%p1166_p8), %s1234_s8, 5  ;;  %s222_s14 = scalar_lea.sflag (!%p1166_p8), [#allocation3], %s1234_s8 }
  0x2f   : > { %s225_s20 = scalar_lea.vmem (!%p1166_p8), [#allocation2], %s690_s10 }
  0x32   : > { %1058 = dma.done.wait (%p1153_p4), %s222_s14, 512  }
  0x33   : > { %1060 = vsyncadd (%p1153_p4), %s222_s14, 4294966784 }
  0x34   : > { %1062 = dma.done.wait (%p43_p1), [#allocation6], 1088  }
  0x35   : > { %1064 = vsyncadd (%p43_p1), [#allocation6], 4294966208 }
  0x36   : > { %1066 = dma.done.wait (%p43_p1), [#allocation9], 1024  }
  0x37   : > { %1068 = vsyncadd (%p43_p1), [#allocation9], 4294966272  ;;  %v1252_v0 = vld [vmem:[%s225_s20 + $0x10] sm:$0xff]  ;;  %v1254_v1 = vld [vmem:[%s225_s20] sm:$0xff]  ;;  %s265_s21 = scalar_lea.vmem [#allocation10], %s690_s10  ;;  %s781_s26 = sshll.u32 %s1144_s19, 5 }
  0x38   : > { %280 = vadd.xlane.f32.xlu0 %v1252_v0  ;;  %v286_v2 = vmul.f32 %v1252_v0, %v1252_v0  ;;  %276 = vadd.xlane.f32.xlu2 %v1254_v1  ;;  %v1260_v3 = vld [vmem:[%s225_s20 + $0x18] sm:$0xff]  ;;  %v1262_v4 = vld [vmem:[%s225_s20 + $0x8] sm:$0xff]  ;;  %v284_v6 = vmul.f32 %v1254_v1, %v1254_v1  ;;  %s574_s12 = scalar_lea.hbm %s1339_s4, %s781_s26  ;;  %s575_s13 = sshll.u32 %s265_s21, 4  ;;  %s576_s13 = int_to_ptr.vmem [resolvable:$true] %s575_s13 }
  0x39   : > { %v287_v5 = vmul.f32 %v1260_v3, %v1260_v3  ;;  %v285_v7 = vmul.f32 %v1262_v4, %v1262_v4  ;;  %v772_v8 = vld [vmem:[#allocation7 + $0x38] sm:$0xff]  ;;  %v771_v9 = vld [vmem:[#allocation7 + $0x30] sm:$0xff]  ;;  %v770_v10 = vld [vmem:[#allocation7 + $0x28] sm:$0xff]  ;;  %s577_s24 = sshll.u32 %s574_s12, 4  ;;  %s563_s19 = scalar_lea.sflag [#allocation4], %s1234_s8  ;;  %s578_s24 = int_to_ptr.hbm [resolvable:$true] %s577_s24 }
  0x3a   : > { %292 = vadd.xlane.f32.xlu1 %v286_v2  ;;  %782 = vmatpush.bf16.msra.mxu2 %v772_v8  ;;  %v769_v11 = vld [vmem:[#allocation7 + $0x20] sm:$0xff]  ;;  %v768_v12 = vld [vmem:[#allocation7 + $0x18] sm:$0xff]  ;;  %v767_v16 = vld [vmem:[#allocation7 + $0x10] sm:$0xff]  ;;  %s1027_s25 = sshra.s32 %s578_s24, 4  ;;  %s1033_s29 = scalar_lea.hbm %s1339_s4, 64  ;;  %s1028_s25 = int_to_ptr.hbm [resolvable:$true] %s1027_s25 }
  0x3b   : > { %445 = vmatpush.bf16.msra.mxu0 %v772_v8  ;;  %v766_v21 = vld [vmem:[#allocation7 + $0x8] sm:$0xff]  ;;  %v765_v26 = vld [vmem:[#allocation7] sm:$0xff]  ;;  %v780_v48 = vld [vmem:[#allocation8 + $0x38] sm:$0xff]  ;;  %s1029_s30 = scalar_lea.hbm %s1028_s25, 32  ;;  %p1034_p9 = scmp.lt.s32.totalorder %s1028_s25, %s1339_s4 }
  0x3c   : > { %790 = vmatpush.bf16.msra.mxu3 %v780_v48  ;;  %535 = vmatpush.bf16.msra.mxu1 %v780_v48  ;;  %v779_v52 = vld [vmem:[#allocation8 + $0x30] sm:$0xff]  ;;  %v778_v58 = vld [vmem:[#allocation8 + $0x28] sm:$0xff]  ;;  %v777_v2 = vld [vmem:[#allocation8 + $0x20] sm:$0xff]  ;;  %p1030_p1 = scmp.ne.s32.totalorder %s1028_s25, %s1029_s30  ;;  %p1035_p10 = scmp.lt.s32.totalorder %s1033_s29, %s1029_s30 }
  0x3e   : > { %783 = vmatpush.bf16.msra.mxu2 %v771_v9  ;;  %p1031_p4 = pnand %p1030_p1, %p1206_p7  ;;  %p1036_p2 = por %p1035_p10, %p1034_p9 }
  0x3f   : > { %446 = vmatpush.bf16.msra.mxu0 %v771_v9  ;;  %v881_v9 = vld [vmem:[#allocation5] ss:$0 sm:$0xff] }
  0x40   : > { %282 = vadd.xlane.f32.xlu0 %v1260_v3  ;;  %278 = vadd.xlane.f32.xlu2 %v1262_v4  ;;  %p1032_p8 = pneg %p1031_p4 }
  0x41   : > { %791 = vmatpush.bf16.msra.mxu3 %v779_v52  ;;  %536 = vmatpush.bf16.msra.mxu1 %v779_v52 }
  0x42   : > { %294 = vadd.xlane.f32.xlu1 %v287_v5  ;;  %784 = vmatpush.bf16.msra.mxu2 %v770_v10  ;;  %p1037_p11 = pnand %p1036_p2, %p1032_p8 }
  0x43   : > { %447 = vmatpush.bf16.msra.mxu0 %v770_v10 }
  0x45   : > { %792 = vmatpush.bf16.msra.mxu3 %v778_v58  ;;  %537 = vmatpush.bf16.msra.mxu1 %v778_v58 }
  0x46   : > { %785 = vmatpush.bf16.msra.mxu2 %v769_v11 }
  0x47   : > { %448 = vmatpush.bf16.msra.mxu0 %v769_v11 }
  0x48   : > { %288 = vadd.xlane.f32.xlu0 %v284_v6 }
  0x49   : > { %793 = vmatpush.bf16.msra.mxu3 %v777_v2  ;;  %538 = vmatpush.bf16.msra.mxu1 %v777_v2 }
  0x4a   : > { %290 = vadd.xlane.f32.xlu1 %v285_v7  ;;  %786 = vmatpush.bf16.msra.mxu2 %v768_v12 }
  0x4b   : > { %449 = vmatpush.bf16.msra.mxu0 %v768_v12 }
  0x4e   : > { %787 = vmatpush.bf16.msra.mxu2 %v767_v16 }
  0x4f   : > { %450 = vmatpush.bf16.msra.mxu0 %v767_v16 }
  0x52   : > { %788 = vmatpush.bf16.msra.mxu2 %v766_v21 }
  0x53   : > { %451 = vmatpush.bf16.msra.mxu0 %v766_v21  ;;  %v882_v21 = vld [vmem:[#allocation5 + $0x1] ss:$0 sm:$0xff] }
  0x56   : > { %789 = vmatpush.bf16.msra.mxu2 %v765_v26 }
  0x57   : > { %452 = vmatpush.bf16.msra.mxu0 %v765_v26 }
  0xab   : > { %v281_v13 = vpop.xlane.xlu0 %280  ;;  %v277_v14 = vpop.xlane.xlu2 %276 }
  0xac   : > { %v1272_v15 = vmul.f32 0.0078125, %v281_v13  ;;  %v1280_v31 = vmul.f32 0.0078125, %v277_v14 }
  0xad   : > { %v293_v17 = vpop.xlane.xlu1 %292 }
  0xae   : > { %v306_v18 = vmul.f32 %v1272_v15, %v1272_v15  ;;  %v302_v19 = vmul.f32 0.0078125, %v293_v17  ;;  %v304_v37 = vmul.f32 %v1280_v31, %v1280_v31  ;;  %v318_v62 = vsub.f32 %v1252_v0, %v1272_v15 }
  0xaf   : > { %v316_v26 = vsub.f32 %v1254_v1, %v1280_v31 }
  0xb0   : > { %v310_v20 = vsub.f32 %v302_v19, %v306_v18 }
  0xb2   : > { %v314_v22 = vmax.f32 %v310_v20, 0.0 }
  0xb3   : > { %v283_v23 = vpop.xlane.xlu0 %282  ;;  %v279_v28 = vpop.xlane.xlu2 %278 }
  0xb4   : > { %v322_v24 = vadd.f32 1e-05, %v314_v22  ;;  %v1276_v25 = vmul.f32 0.0078125, %v283_v23  ;;  %v1282_v32 = vmul.f32 0.0078125, %v279_v28 }
  0xb5   : > { %v295_v27 = vpop.xlane.xlu1 %294 }
  0xb6   : > { %885 = vrsqrt.f32 %v322_v24  ;;  %v307_v29 = vmul.f32 %v1276_v25, %v1276_v25  ;;  %v303_v30 = vmul.f32 0.0078125, %v295_v27  ;;  %v305_v38 = vmul.f32 %v1282_v32, %v1282_v32 }
  0xb7   : > { %vm350_vm1 = vweird.f32 %v322_v24  ;;  %v319_v13 = vsub.f32 %v1260_v3, %v1276_v25 }
  0xb8   : > { %v311_v33 = vsub.f32 %v303_v30, %v307_v29  ;;  %v317_v30 = vsub.f32 %v1262_v4, %v1282_v32  ;;  %v773_v32 = vld [vmem:[#allocation8] sm:$0xff] }
  0xba   : > { %v315_v34 = vmax.f32 %v311_v33, 0.0 }
  0xbb   : > { %v289_v35 = vpop.xlane.xlu0 %288 }
  0xbc   : > { %v886_v36 = vpop.eup %885  ;;  %v300_v39 = vmul.f32 0.0078125, %v289_v35  ;;  %v323_v41 = vadd.f32 1e-05, %v315_v34 }
  0xbd   : > { %v345_v40 = vmul.f32 %v886_v36, %v322_v24  ;;  %v291_v42 = vpop.xlane.xlu1 %290  ;;  %vm351_vm0 = vweird.f32 %v886_v36 }
  0xbe   : > { %v308_v43 = vsub.f32 %v300_v39, %v304_v37  ;;  %v301_v44 = vmul.f32 0.0078125, %v291_v42  ;;  %887 = vrsqrt.f32 %v323_v41  ;;  %vm352_vm2 = vmor %vm350_vm1, %vm351_vm0  ;;  %vm360_vm4 = vweird.f32 %v323_v41  ;;  %v775_v42 = vld [vmem:[#allocation8 + $0x10] sm:$0xff] }
  0xbf   : > { %v346_v45 = vmul.f32 %v886_v36, %v345_v40 }
  0xc0   : > { %v312_v46 = vmax.f32 %v308_v43, 0.0  ;;  %v309_v47 = vsub.f32 %v301_v44, %v305_v38  ;;  %v774_v43 = vld [vmem:[#allocation8 + $0x8] sm:$0xff] }
  0xc1   : > { %v347_v49 = vmul.f32 0.5, %v346_v45 }
  0xc2   : > { %v320_v50 = vadd.f32 1e-05, %v312_v46  ;;  %v313_v51 = vmax.f32 %v309_v47, 0.0  ;;  %v883_v46 = vld [vmem:[#allocation5 + $0x2] ss:$0 sm:$0xff] }
  0xc3   : > { %v348_v53 = vsub.f32 1.5, %v347_v49 }
  0xc4   : > { %889 = vrsqrt.f32 %v320_v50  ;;  %v321_v54 = vadd.f32 1e-05, %v313_v51  ;;  %v888_v55 = vpop.eup %887  ;;  %vm330_vm7 = vweird.f32 %v320_v50 }
  0xc5   : > { %v349_v56 = vmul.f32 %v886_v36, %v348_v53  ;;  %v355_v57 = vmul.f32 %v888_v55, %v323_v41  ;;  %vm361_vm3 = vweird.f32 %v888_v55  ;;  %v776_v41 = vld [vmem:[#allocation8 + $0x18] sm:$0xff] }
  0xc6   : > { %891 = vrsqrt.f32 %v321_v54  ;;  %vm362_vm5 = vmor %vm360_vm4, %vm361_vm3  ;;  %vm340_vm10 = vweird.f32 %v321_v54  ;;  %794 = vmatpush.bf16.msra.mxu3 %v776_v41  ;;  %539 = vmatpush.bf16.msra.mxu1 %v776_v41 }
  0xc7   : > { %v356_v59 = vmul.f32 %v888_v55, %v355_v57  ;;  %v353_v60 = vsel %vm352_vm2, %v886_v36, %v349_v56 }
  0xc8   : > { %v366_v8 = vmul.f32 %v353_v60, %v318_v62 }
  0xc9   : > { %v357_v63 = vmul.f32 0.5, %v356_v59  ;;  %v884_v59 = vld [vmem:[#allocation5 + $0x3] ss:$0 sm:$0xff] }
  0xca   : > { %v890_v61 = vpop.eup %889  ;;  %v371_v17 = vmul.f32 %v881_v9, %v366_v8  ;;  %795 = vmatpush.bf16.msra.mxu3 %v775_v42  ;;  %540 = vmatpush.bf16.msra.mxu1 %v775_v42 }
  0xcb   : > { %v325_v5 = vmul.f32 %v890_v61, %v320_v50  ;;  %v358_v7 = vsub.f32 1.5, %v357_v63  ;;  %vm331_vm6 = vweird.f32 %v890_v61 }
  0xcc   : > { %v892_v6 = vpop.eup %891  ;;  %vm332_vm9 = vmor %vm330_vm7, %vm331_vm6  ;;  %v376_v27 = vadd.f32 %v882_v21, %v371_v17 }
  0xcd   : > { %v326_v10 = vmul.f32 %v890_v61, %v325_v5  ;;  %v335_v11 = vmul.f32 %v892_v6, %v321_v54  ;;  %v359_v12 = vmul.f32 %v888_v55, %v358_v7  ;;  %vm341_vm8 = vweird.f32 %v892_v6 }
  0xce   : > { %vm342_vm11 = vmor %vm340_vm10, %vm341_vm8  ;;  %796 = vmatpush.bf16.msra.mxu3 %v774_v43  ;;  %541 = vmatpush.bf16.msra.mxu1 %v774_v43 }
  0xcf   : > { %v327_v14 = vmul.f32 0.5, %v326_v10  ;;  %v336_v15 = vmul.f32 %v892_v6, %v335_v11  ;;  %v363_v16 = vsel %vm362_vm5, %v888_v55, %v359_v12 }
  0xd0   : > { %v367_v20 = vmul.f32 %v363_v16, %v319_v13 }
  0xd1   : > { %v328_v18 = vsub.f32 1.5, %v327_v14  ;;  %v337_v19 = vmul.f32 0.5, %v336_v15 }
  0xd2   : > { %v372_v24 = vmul.f32 %v881_v9, %v367_v20  ;;  %797 = vmatpush.bf16.msra.mxu3 %v773_v32  ;;  %542 = vmatpush.bf16.msra.mxu1 %v773_v32 }
  0xd3   : > { %v329_v22 = vmul.f32 %v890_v61, %v328_v18  ;;  %v338_v23 = vsub.f32 1.5, %v337_v19 }
  0xd4   : > { %v377_v28 = vadd.f32 %v882_v21, %v372_v24 }
  0xd5   : > { %v339_v25 = vmul.f32 %v892_v6, %v338_v23  ;;  %v333_v29 = vsel %vm332_vm9, %v890_v61, %v329_v22 }
  0xd6   : > { %v364_v33 = vmul.f32 %v333_v29, %v316_v26  ;;  %v379_v34 = vpack.c.bf16 %v377_v28, %v376_v27 }
  0xd7   : > { %v343_v35 = vsel %vm342_vm11, %v892_v6, %v339_v25 }
  0xd8   : > { %v365_v36 = vmul.f32 %v343_v35, %v317_v30  ;;  %v369_v37 = vmul.f32 %v881_v9, %v364_v33  ;;  %458 = vmatmul.bf16.vlgmr.msra.gmra.mxu2 %v379_v34 }
  0xda   : > { %v370_v38 = vmul.f32 %v881_v9, %v365_v36  ;;  %v374_v39 = vadd.f32 %v882_v21, %v369_v37 }
  0xdc   : > { %v375_v40 = vadd.f32 %v882_v21, %v370_v38 }
  0xde   : > { %v378_v31 = vpack.c.bf16 %v375_v40, %v374_v39 }
  0xe0   : > { %453 = vmatmul.bf16.vlgmr.msra.gmra.mxu0 %v378_v31 }
 0x15b   : > { %v459_v44 = vpop.f32.mrf.mxu2 }
 0x15c   : > { %v460_v47 = vadd.f32 %v883_v46, %v459_v44 }
 0x15d   : > { %v454_v45 = vpop.f32.mrf.mxu0 }
 0x15e   : > { %v455_v48 = vadd.f32 %v883_v46, %v454_v45  ;;  %v466_v53 = vmax.f32 %v460_v47, 0.0 }
 0x160   : > { %v464_v55 = vmax.f32 %v455_v48, 0.0 }
 0x163   : > { %v461_v49 = vpop.f32.mrf.mxu2 }
 0x164   : > { %v462_v50 = vadd.f32 %v883_v46, %v461_v49 }
 0x165   : > { %v456_v51 = vpop.f32.mrf.mxu0 }
 0x166   : > { %v457_v52 = vadd.f32 %v883_v46, %v456_v51  ;;  %v467_v54 = vmax.f32 %v462_v50, 0.0 }
 0x168   : > { %v465_v56 = vmax.f32 %v457_v52, 0.0  ;;  %v469_v57 = vpack.c.bf16 %v467_v54, %v466_v53 }
 0x16a   : > { %v468_v58 = vpack.c.bf16 %v465_v56, %v464_v55  ;;  %548 = vmatmul.bf16.vlgmr.msra.gmra.mxu3 %v469_v57 }
 0x16c   : > { %543 = vmatmul.bf16.vlgmr.msra.gmra.mxu1 %v468_v58 }
 0x1e9   : > { %v544_v60 = vpop.f32.mrf.mxu1 }
 0x1ea   : > { %v545_v61 = vadd.f32 %v884_v59, %v544_v60 }
 0x1ec   : > { %v554_v62 = vadd.f32 %v545_v61, %v1254_v1 }
 0x1ed   : > { %v549_v63 = vpop.f32.mrf.mxu3 }
 0x1ee   : > { %558 = vst [vmem:[%s265_s21] sm:$0xff] %v554_v62  ;;  %v550_v2 = vadd.f32 %v884_v59, %v549_v63 }
 0x1f0   : > { %v556_v5 = vadd.f32 %v550_v2, %v1252_v0 }
 0x1f1   : > { %v546_v6 = vpop.f32.mrf.mxu1 }
 0x1f2   : > { %v547_v7 = vadd.f32 %v884_v59, %v546_v6  ;;  %560 = vst [vmem:[%s265_s21 + $0x10] sm:$0xff] %v556_v5 }
 0x1f4   : > { %v555_v1 = vadd.f32 %v547_v7, %v1262_v4 }
 0x1f5   : > { %v551_v8 = vpop.f32.mrf.mxu3 }
 0x1f6   : > { %559 = vst [vmem:[%s265_s21 + $0x8] sm:$0xff] %v555_v1  ;;  %v552_v9 = vadd.f32 %v884_v59, %v551_v8 }
 0x1f8   : > { %v557_v10 = vadd.f32 %v552_v9, %v1260_v3 }
 0x1fa   : > { %561 = vst [vmem:[%s265_s21 + $0x18] sm:$0xff] %v557_v10 }
 0x1fb   : > { %1040 = shalt.err (!%p1037_p11)
}
 0x1fc   : > { %s1096_s8 = smov 128   ;;  %s1097_s14 = smov 8  }
 0x1fd   : > { %812 = dma.vmem_to_hbm [thread:$0]  (%p1206_p7), %s576_s13, 512, %s578_s24, %s563_s19, %s1096_s8, %s1096_s8, %s1097_s14  }
 0x1fe PF: > { %s592_s20 = sand.u32 1, %s1075_s15   ;;  %p1346_p12 = scmp.ge.s32.totalorder %s1087_s18, 2 }
 0x1ff   : > { %s593_s21 = scalar_lea.sflag [#allocation4], %s592_s20 }
 0x200   : > { %p829_p13 = pnand %p1346_p12, %p1158_p6 }
 0x202   : > { %p830_p0 = pneg %p829_p13 }
 0x204   : > { %1070 = dma.done.wait (%p830_p0), %s593_s21, 512  }
 0x205   : > { %1072 = vsyncadd (%p830_p0), %s593_s21, 4294966784  ;;  %p19_p3 = scmp.ge.s32.totalorder %s1192_s23, 4   ;;  %s1347_s15 = smov %s1079_s16 }
 0x206   : > { %s1348_s16 = smov %s1083_s17  ;;  %s1349_s17 = smov %s1202_s27 }
 0x207   : > { %s1350_s18 = smov %s1192_s23  ;;  %21 = sbr.rel (!%p19_p3) target bundleno = 7 (0x7), region = 93 }
 0x20c   :  { %599 = vsyncpa [#allocation3], 1 }
 0x20d   :  { %601 = vsyncpa [#allocation3 + $0x1], 1 }
 0x20e   :  { %602 = vsyncpa [#allocation6], 1 }
 0x20f   :  { %603 = vsyncpa [#allocation9], 1 }
 0x210   :  { %604 = vsyncpa [#allocation4], 1 }
 0x211   :  { %606 = vsyncpa [#allocation4 + $0x1], 1 }

// kernel: block_forward.1
= control target key start
LH: loop header
LB: loop body
LE: loop exit
PB: predicated region body
PF: predicated region fallthrough
CT: control target
= control target key end

     0   :  { %9 = vsyncpa [#allocation3], 0  ;;  %s1335_s0 = inlined_call_operand.hbm [shape: f32[64,128], index: 0, kind: input, shape index: {}]   ;;  %s1336_s1 = inlined_call_operand.hbm [shape: f32[4,128], index: 1, kind: input, shape index: {}]   ;;  %s1337_s2 = inlined_call_operand.hbm [shape: bf16[128,128], index: 2, kind: input, shape index: {}]   ;;  %s1338_s3 = inlined_call_operand.hbm [shape: bf16[128,128], index: 3, kind: input, shape index: {}]   ;;  %s1339_s4 = inlined_call_operand.hbm [shape: f32[64,128], index: 4, kind: output, shape index: {}]  }
   0x1   :  { %11 = vsyncpa [#allocation3 + $0x1], 0 }
   0x2   :  { %12 = vsyncpa [#allocation6], 0 }
   0x3   :  { %13 = vsyncpa [#allocation9], 0 }
   0x4   :  { %14 = vsyncpa [#allocation4], 0 }
   0x5   :  { %16 = vsyncpa [#allocation4 + $0x1], 0  ;;  %s1123_s15 = smov 0   ;;  %s1125_s16 = smov 0  }
   0x6   :  { %s1127_s17 = smov 0   ;;  %s1129_s18 = smov 0  }
   0x7 LB: > { %s1144_s19 = sadd.s32 4294967295, %s1087_s18   ;;  %s680_s20 = sadd.s32 4294967294, %s1087_s18   ;;  %s1087_s18 = sphi %s1129_s18, %s1350_s18   ;;  %s1083_s17 = sphi %s1127_s17, %s1349_s17   ;;  %s1079_s16 = sphi %s1125_s16, %s1348_s16   ;;  %s1075_s15 = sphi %s1123_s15, %s1347_s15  }
   0x8   : > { %p42_p0 = scmp.ne.s32.totalorder %s1079_s16, %s1075_s15  ;;  %p43_p1 = scmp.eq.s32.totalorder %s1144_s19, 0 }
   0x9   : > { %p129_p2 = scmp.eq.s32.totalorder %s1144_s19, 1  ;;  %p135_p3 = scmp.eq.s32.totalorder %s680_s20, 1 }
   0xa   : > { %p1153_p4 = por %p43_p1, %p42_p0  ;;  %p681_p5 = scmp.ge.s32.totalorder %s1087_s18, 1 }
   0xb   : > { %p1158_p6 = por %p135_p3, %p42_p0  ;;  %p142_p7 = scmp.lt.s32.totalorder %s1087_s18, 3 }
   0xc   : > { %s154_s25 = sshll.u32 %s1336_s1, 4  ;;  %s1089_s27 = smov [#allocation5]   ;;  %s155_s25 = int_to_ptr.hbm [resolvable:$true] %s154_s25 }
   0xd   : > { %p1166_p8 = pnand %p681_p5, %p142_p7  ;;  %s156_s28 = sshll.u32 %s1089_s27, 4  ;;  %s157_s28 = int_to_ptr.vmem [resolvable:$true] %s156_s28 }
   0xe   : > { %s165_s5 = sshll.u32 %s1337_s2, 4  ;;  %s1090_s7 = smov [#allocation7]   ;;  %s166_s5 = int_to_ptr.hbm [resolvable:$true] %s165_s5 }
   0xf   : > { %p814_p10 = pneg %p1166_p8  ;;  %s167_s8 = sshll.u32 %s1090_s7, 4  ;;  %s168_s8 = int_to_ptr.vmem [resolvable:$true] %s167_s8 }
  0x10   : > { %s1091_s9 = smov 64   ;;  %s1092_s10 = smov 4  }
  0x11   : > { %p1178_p11 = pnand %p814_p10, %p43_p1  ;;  %s179_s13 = sshll.u32 %s1338_s3, 4  ;;  %s180_s13 = int_to_ptr.hbm [resolvable:$true] %s179_s13 }
  0x12   : > { %s1093_s14 = smov [#allocation8]   ;;  %s1192_s23 = sadd.s32 1, %s1087_s18  }
  0x13   : > { %817 = dma.hbm_to_vmem [thread:$0]  (!%p1178_p11), %s155_s25, 64, %s157_s28, [#allocation6]  }
  0x14   : > { %820 = dma.hbm_to_vmem [thread:$0]  (!%p1178_p11), %s166_s5, 1024, %s168_s8, [#allocation6], %s1091_s9, %s1091_s9, %s1092_s10  }
  0x15   : > { %s181_s20 = sshll.u32 %s1093_s14, 4  ;;  %s26_s24 = ssub.s32 %s1087_s18, %s1192_s23  ;;  %s182_s20 = int_to_ptr.vmem [resolvable:$true] %s181_s20 }
  0x16   : > { %823 = dma.hbm_to_vmem [thread:$0]  (!%p1178_p11), %s180_s13, 1024, %s182_s20, [#allocation9], %s1091_s9, %s1091_s9, %s1092_s10  }
  0x17   : > { %s29_s25 = sadd.s32 1, %s1083_s17  ;;  %p27_p12 = scmp.eq.s32.totalorder %s26_s24, 0 }
  0x18   : > { %p36_p13 = scmp.ne.s32.totalorder %s1083_s17, %s1079_s16  ;;  %p37_p0 = scmp.eq.s32.totalorder %s1087_s18, 0 }
  0x19   : > { %p835_p3 = scmp.lt.s32.totalorder %s1087_s18, 2  ;;  %s195_s29 = sand.u32 1, %s1083_s17  }
  0x1a   : > { %s1202_s27 = scalar_select %p27_p12, %s1083_s17, %s29_s25  }
  0x1b   : > { %p38_p5 = por %p37_p0, %p36_p13  ;;  %p1206_p7 = por %p129_p2, %p36_p13 }
  0x1c   : > { %s764_s30 = sshll.u32 %s1087_s18, 5  ;;  %s686_s5 = sshll.u32 %s195_s29, 5 }
  0x1d   : > { %s204_s8 = scalar_lea.hbm %s1335_s0, %s764_s30  ;;  %s199_s10 = scalar_lea.vmem [#allocation2], %s686_s5 }
  0x1e   : > { %s205_s9 = sshll.u32 %s204_s8, 4  ;;  %s207_s11 = sshll.u32 %s199_s10, 4  ;;  %s206_s9 = int_to_ptr.hbm [resolvable:$true] %s205_s9  ;;  %s208_s11 = int_to_ptr.vmem [resolvable:$true] %s207_s11 }
  0x1f   : > { %p1217_p10 = pnand %p835_p3, %p38_p5  ;;  %s196_s13 = scalar_lea.sflag [#allocation3], %s195_s29 }
  0x20   : > { %s983_s14 = sshra.s32 %s206_s9, 4  ;;  %s990_s30 = scalar_lea.hbm %s1335_s0, 64  ;;  %s984_s14 = int_to_ptr.hbm [resolvable:$true] %s983_s14 }
  0x21   : > { %s985_s20 = scalar_lea.hbm %s984_s14, 32  ;;  %p987_p11 = pneg %p1217_p10 }
  0x22   : > { %p986_p2 = scmp.ne.s32.totalorder %s984_s14, %s985_s20  ;;  %p991_p0 = scmp.lt.s32.totalorder %s984_s14, %s1335_s0 }
  0x23   : > { %p992_p3 = scmp.lt.s32.totalorder %s990_s30, %s985_s20 }
  0x24   : > { %p988_p12 = pnand %p987_p11, %p986_p2 }
  0x25   : > { %p993_p5 = por %p992_p3, %p991_p0 }
  0x26   : > { %p989_p13 = pneg %p988_p12 }
  0x28   : > { %p994_p9 = pnand %p993_p5, %p989_p13 }
  0x2a   : > { %997 = shalt.err (!%p994_p9)
}
  0x2b   : > { %s1094_s29 = smov 128   ;;  %s1095_s7 = smov 8  }
  0x2c   : > { %827 = dma.hbm_to_vmem [thread:$0]  (!%p1217_p10), %s206_s9, 512, %s208_s11, %s196_s13, %s1094_s29, %s1094_s29, %s1095_s7  }
  0x2d   : > { %219 = sbr.rel (%p1166_p8) target bundleno = 510 (0x1fe), region = 36  ;;  %s1234_s8 = sand.u32 (!%p1166_p8), 1, %s1079_s16  }
  0x2e   : > { %s690_s10 = sshll.u32 (!%p1166_p8), %s1234_s8, 5  ;;  %s222_s14 = scalar_lea.sflag (!%p1166_p8), [#allocation3], %s1234_s8 }
  0x2f   : > { %s225_s20 = scalar_lea.vmem (!%p1166_p8), [#allocation2], %s690_s10 }
  0x32   : > { %1058 = dma.done.wait (%p1153_p4), %s222_s14, 512  }
  0x33   : > { %1060 = vsyncadd (%p1153_p4), %s222_s14, 4294966784 }
  0x34   : > { %1062 = dma.done.wait (%p43_p1), [#allocation6], 1088  }
  0x35   : > { %1064 = vsyncadd (%p43_p1), [#allocation6], 4294966208 }
  0x36   : > { %1066 = dma.done.wait (%p43_p1), [#allocation9], 1024  }
  0x37   : > { %1068 = vsyncadd (%p43_p1), [#allocation9], 4294966272  ;;  %v1252_v0 = vld [vmem:[%s225_s20 + $0x10] sm:$0xff]  ;;  %v1254_v1 = vld [vmem:[%s225_s20] sm:$0xff]  ;;  %s265_s21 = scalar_lea.vmem [#allocation10], %s690_s10  ;;  %s781_s26 = sshll.u32 %s1144_s19, 5 }
  0x38   : > { %280 = vadd.xlane.f32.xlu0 %v1252_v0  ;;  %v286_v2 = vmul.f32 %v1252_v0, %v1252_v0  ;;  %276 = vadd.xlane.f32.xlu2 %v1254_v1  ;;  %v1260_v3 = vld [vmem:[%s225_s20 + $0x18] sm:$0xff]  ;;  %v1262_v4 = vld [vmem:[%s225_s20 + $0x8] sm:$0xff]  ;;  %v284_v6 = vmul.f32 %v1254_v1, %v1254_v1  ;;  %s574_s12 = scalar_lea.hbm %s1339_s4, %s781_s26  ;;  %s575_s13 = sshll.u32 %s265_s21, 4  ;;  %s576_s13 = int_to_ptr.vmem [resolvable:$true] %s575_s13 }
  0x39   : > { %v287_v5 = vmul.f32 %v1260_v3, %v1260_v3  ;;  %v285_v7 = vmul.f32 %v1262_v4, %v1262_v4  ;;  %v772_v8 = vld [vmem:[#allocation7 + $0x38] sm:$0xff]  ;;  %v771_v9 = vld [vmem:[#allocation7 + $0x30] sm:$0xff]  ;;  %v770_v10 = vld [vmem:[#allocation7 + $0x28] sm:$0xff]  ;;  %s577_s24 = sshll.u32 %s574_s12, 4  ;;  %s563_s19 = scalar_lea.sflag [#allocation4], %s1234_s8  ;;  %s578_s24 = int_to_ptr.hbm [resolvable:$true] %s577_s24 }
  0x3a   : > { %292 = vadd.xlane.f32.xlu1 %v286_v2  ;;  %782 = vmatpush.bf16.msra.mxu2 %v772_v8  ;;  %v769_v11 = vld [vmem:[#allocation7 + $0x20] sm:$0xff]  ;;  %v768_v12 = vld [vmem:[#allocation7 + $0x18] sm:$0xff]  ;;  %v767_v16 = vld [vmem:[#allocation7 + $0x10] sm:$0xff]  ;;  %s1027_s25 = sshra.s32 %s578_s24, 4  ;;  %s1033_s29 = scalar_lea.hbm %s1339_s4, 64  ;;  %s1028_s25 = int_to_ptr.hbm [resolvable:$true] %s1027_s25 }
  0x3b   : > { %445 = vmatpush.bf16.msra.mxu0 %v772_v8  ;;  %v766_v21 = vld [vmem:[#allocation7 + $0x8] sm:$0xff]  ;;  %v765_v26 = vld [vmem:[#allocation7] sm:$0xff]  ;;  %v780_v48 = vld [vmem:[#allocation8 + $0x38] sm:$0xff]  ;;  %s1029_s30 = scalar_lea.hbm %s1028_s25, 32  ;;  %p1034_p9 = scmp.lt.s32.totalorder %s1028_s25, %s1339_s4 }
  0x3c   : > { %790 = vmatpush.bf16.msra.mxu3 %v780_v48  ;;  %535 = vmatpush.bf16.msra.mxu1 %v780_v48  ;;  %v779_v52 = vld [vmem:[#allocation8 + $0x30] sm:$0xff]  ;;  %v778_v58 = vld [vmem:[#allocation8 + $0x28] sm:$0xff]  ;;  %v777_v2 = vld [vmem:[#allocation8 + $0x20] sm:$0xff]  ;;  %p1030_p1 = scmp.ne.s32.totalorder %s1028_s25, %s1029_s30  ;;  %p1035_p10 = scmp.lt.s32.totalorder %s1033_s29, %s1029_s30 }
  0x3e   : > { %783 = vmatpush.bf16.msra.mxu2 %v771_v9  ;;  %p1031_p4 = pnand %p1030_p1, %p1206_p7  ;;  %p1036_p2 = por %p1035_p10, %p1034_p9 }
  0x3f   : > { %446 = vmatpush.bf16.msra.mxu0 %v771_v9  ;;  %v881_v9 = vld [vmem:[#allocation5] ss:$0 sm:$0xff] }
  0x40   : > { %282 = vadd.xlane.f32.xlu0 %v1260_v3  ;;  %278 = vadd.xlane.f32.xlu2 %v1262_v4  ;;  %p1032_p8 = pneg %p1031_p4 }
  0x41   : > { %791 = vmatpush.bf16.msra.mxu3 %v779_v52  ;;  %536 = vmatpush.bf16.msra.mxu1 %v779_v52 }
  0x42   : > { %294 = vadd.xlane.f32.xlu1 %v287_v5  ;;  %784 = vmatpush.bf16.msra.mxu2 %v770_v10  ;;  %p1037_p11 = pnand %p1036_p2, %p1032_p8 }
  0x43   : > { %447 = vmatpush.bf16.msra.mxu0 %v770_v10 }
  0x45   : > { %792 = vmatpush.bf16.msra.mxu3 %v778_v58  ;;  %537 = vmatpush.bf16.msra.mxu1 %v778_v58 }
  0x46   : > { %785 = vmatpush.bf16.msra.mxu2 %v769_v11 }
  0x47   : > { %448 = vmatpush.bf16.msra.mxu0 %v769_v11 }
  0x48   : > { %288 = vadd.xlane.f32.xlu0 %v284_v6 }
  0x49   : > { %793 = vmatpush.bf16.msra.mxu3 %v777_v2  ;;  %538 = vmatpush.bf16.msra.mxu1 %v777_v2 }
  0x4a   : > { %290 = vadd.xlane.f32.xlu1 %v285_v7  ;;  %786 = vmatpush.bf16.msra.mxu2 %v768_v12 }
  0x4b   : > { %449 = vmatpush.bf16.msra.mxu0 %v768_v12 }
  0x4e   : > { %787 = vmatpush.bf16.msra.mxu2 %v767_v16 }
  0x4f   : > { %450 = vmatpush.bf16.msra.mxu0 %v767_v16 }
  0x52   : > { %788 = vmatpush.bf16.msra.mxu2 %v766_v21 }
  0x53   : > { %451 = vmatpush.bf16.msra.mxu0 %v766_v21  ;;  %v882_v21 = vld [vmem:[#allocation5 + $0x1] ss:$0 sm:$0xff] }
  0x56   : > { %789 = vmatpush.bf16.msra.mxu2 %v765_v26 }
  0x57   : > { %452 = vmatpush.bf16.msra.mxu0 %v765_v26 }
  0xab   : > { %v281_v13 = vpop.xlane.xlu0 %280  ;;  %v277_v14 = vpop.xlane.xlu2 %276 }
  0xac   : > { %v1272_v15 = vmul.f32 0.0078125, %v281_v13  ;;  %v1280_v31 = vmul.f32 0.0078125, %v277_v14 }
  0xad   : > { %v293_v17 = vpop.xlane.xlu1 %292 }
  0xae   : > { %v306_v18 = vmul.f32 %v1272_v15, %v1272_v15  ;;  %v302_v19 = vmul.f32 0.0078125, %v293_v17  ;;  %v304_v37 = vmul.f32 %v1280_v31, %v1280_v31  ;;  %v318_v62 = vsub.f32 %v1252_v0, %v1272_v15 }
  0xaf   : > { %v316_v26 = vsub.f32 %v1254_v1, %v1280_v31 }
  0xb0   : > { %v310_v20 = vsub.f32 %v302_v19, %v306_v18 }
  0xb2   : > { %v314_v22 = vmax.f32 %v310_v20, 0.0 }
  0xb3   : > { %v283_v23 = vpop.xlane.xlu0 %282  ;;  %v279_v28 = vpop.xlane.xlu2 %278 }
  0xb4   : > { %v322_v24 = vadd.f32 1e-05, %v314_v22  ;;  %v1276_v25 = vmul.f32 0.0078125, %v283_v23  ;;  %v1282_v32 = vmul.f32 0.0078125, %v279_v28 }
  0xb5   : > { %v295_v27 = vpop.xlane.xlu1 %294 }
  0xb6   : > { %885 = vrsqrt.f32 %v322_v24  ;;  %v307_v29 = vmul.f32 %v1276_v25, %v1276_v25  ;;  %v303_v30 = vmul.f32 0.0078125, %v295_v27  ;;  %v305_v38 = vmul.f32 %v1282_v32, %v1282_v32 }
  0xb7   : > { %vm350_vm1 = vweird.f32 %v322_v24  ;;  %v319_v13 = vsub.f32 %v1260_v3, %v1276_v25 }
  0xb8   : > { %v311_v33 = vsub.f32 %v303_v30, %v307_v29  ;;  %v317_v30 = vsub.f32 %v1262_v4, %v1282_v32  ;;  %v773_v32 = vld [vmem:[#allocation8] sm:$0xff] }
  0xba   : > { %v315_v34 = vmax.f32 %v311_v33, 0.0 }
  0xbb   : > { %v289_v35 = vpop.xlane.xlu0 %288 }
  0xbc   : > { %v886_v36 = vpop.eup %885  ;;  %v300_v39 = vmul.f32 0.0078125, %v289_v35  ;;  %v323_v41 = vadd.f32 1e-05, %v315_v34 }
  0xbd   : > { %v345_v40 = vmul.f32 %v886_v36, %v322_v24  ;;  %v291_v42 = vpop.xlane.xlu1 %290  ;;  %vm351_vm0 = vweird.f32 %v886_v36 }
  0xbe   : > { %v308_v43 = vsub.f32 %v300_v39, %v304_v37  ;;  %v301_v44 = vmul.f32 0.0078125, %v291_v42  ;;  %887 = vrsqrt.f32 %v323_v41  ;;  %vm352_vm2 = vmor %vm350_vm1, %vm351_vm0  ;;  %vm360_vm4 = vweird.f32 %v323_v41  ;;  %v775_v42 = vld [vmem:[#allocation8 + $0x10] sm:$0xff] }
  0xbf   : > { %v346_v45 = vmul.f32 %v886_v36, %v345_v40 }
  0xc0   : > { %v312_v46 = vmax.f32 %v308_v43, 0.0  ;;  %v309_v47 = vsub.f32 %v301_v44, %v305_v38  ;;  %v774_v43 = vld [vmem:[#allocation8 + $0x8] sm:$0xff] }
  0xc1   : > { %v347_v49 = vmul.f32 0.5, %v346_v45 }
  0xc2   : > { %v320_v50 = vadd.f32 1e-05, %v312_v46  ;;  %v313_v51 = vmax.f32 %v309_v47, 0.0  ;;  %v883_v46 = vld [vmem:[#allocation5 + $0x2] ss:$0 sm:$0xff] }
  0xc3   : > { %v348_v53 = vsub.f32 1.5, %v347_v49 }
  0xc4   : > { %889 = vrsqrt.f32 %v320_v50  ;;  %v321_v54 = vadd.f32 1e-05, %v313_v51  ;;  %v888_v55 = vpop.eup %887  ;;  %vm330_vm7 = vweird.f32 %v320_v50 }
  0xc5   : > { %v349_v56 = vmul.f32 %v886_v36, %v348_v53  ;;  %v355_v57 = vmul.f32 %v888_v55, %v323_v41  ;;  %vm361_vm3 = vweird.f32 %v888_v55  ;;  %v776_v41 = vld [vmem:[#allocation8 + $0x18] sm:$0xff] }
  0xc6   : > { %891 = vrsqrt.f32 %v321_v54  ;;  %vm362_vm5 = vmor %vm360_vm4, %vm361_vm3  ;;  %vm340_vm10 = vweird.f32 %v321_v54  ;;  %794 = vmatpush.bf16.msra.mxu3 %v776_v41  ;;  %539 = vmatpush.bf16.msra.mxu1 %v776_v41 }
  0xc7   : > { %v356_v59 = vmul.f32 %v888_v55, %v355_v57  ;;  %v353_v60 = vsel %vm352_vm2, %v886_v36, %v349_v56 }
  0xc8   : > { %v366_v8 = vmul.f32 %v353_v60, %v318_v62 }
  0xc9   : > { %v357_v63 = vmul.f32 0.5, %v356_v59  ;;  %v884_v59 = vld [vmem:[#allocation5 + $0x3] ss:$0 sm:$0xff] }
  0xca   : > { %v890_v61 = vpop.eup %889  ;;  %v371_v17 = vmul.f32 %v881_v9, %v366_v8  ;;  %795 = vmatpush.bf16.msra.mxu3 %v775_v42  ;;  %540 = vmatpush.bf16.msra.mxu1 %v775_v42 }
  0xcb   : > { %v325_v5 = vmul.f32 %v890_v61, %v320_v50  ;;  %v358_v7 = vsub.f32 1.5, %v357_v63  ;;  %vm331_vm6 = vweird.f32 %v890_v61 }
  0xcc   : > { %v892_v6 = vpop.eup %891  ;;  %vm332_vm9 = vmor %vm330_vm7, %vm331_vm6  ;;  %v376_v27 = vadd.f32 %v882_v21, %v371_v17 }
  0xcd   : > { %v326_v10 = vmul.f32 %v890_v61, %v325_v5  ;;  %v335_v11 = vmul.f32 %v892_v6, %v321_v54  ;;  %v359_v12 = vmul.f32 %v888_v55, %v358_v7  ;;  %vm341_vm8 = vweird.f32 %v892_v6 }
  0xce   : > { %vm342_vm11 = vmor %vm340_vm10, %vm341_vm8  ;;  %796 = vmatpush.bf16.msra.mxu3 %v774_v43  ;;  %541 = vmatpush.bf16.msra.mxu1 %v774_v43 }
  0xcf   : > { %v327_v14 = vmul.f32 0.5, %v326_v10  ;;  %v336_v15 = vmul.f32 %v892_v6, %v335_v11  ;;  %v363_v16 = vsel %vm362_vm5, %v888_v55, %v359_v12 }
  0xd0   : > { %v367_v20 = vmul.f32 %v363_v16, %v319_v13 }
  0xd1   : > { %v328_v18 = vsub.f32 1.5, %v327_v14  ;;  %v337_v19 = vmul.f32 0.5, %v336_v15 }
  0xd2   : > { %v372_v24 = vmul.f32 %v881_v9, %v367_v20  ;;  %797 = vmatpush.bf16.msra.mxu3 %v773_v32  ;;  %542 = vmatpush.bf16.msra.mxu1 %v773_v32 }
  0xd3   : > { %v329_v22 = vmul.f32 %v890_v61, %v328_v18  ;;  %v338_v23 = vsub.f32 1.5, %v337_v19 }
  0xd4   : > { %v377_v28 = vadd.f32 %v882_v21, %v372_v24 }
  0xd5   : > { %v339_v25 = vmul.f32 %v892_v6, %v338_v23  ;;  %v333_v29 = vsel %vm332_vm9, %v890_v61, %v329_v22 }
  0xd6   : > { %v364_v33 = vmul.f32 %v333_v29, %v316_v26  ;;  %v379_v34 = vpack.c.bf16 %v377_v28, %v376_v27 }
  0xd7   : > { %v343_v35 = vsel %vm342_vm11, %v892_v6, %v339_v25 }
  0xd8   : > { %v365_v36 = vmul.f32 %v343_v35, %v317_v30  ;;  %v369_v37 = vmul.f32 %v881_v9, %v364_v33  ;;  %458 = vmatmul.bf16.vlgmr.msra.gmra.mxu2 %v379_v34 }
  0xda   : > { %v370_v38 = vmul.f32 %v881_v9, %v365_v36  ;;  %v374_v39 = vadd.f32 %v882_v21, %v369_v37 }
  0xdc   : > { %v375_v40 = vadd.f32 %v882_v21, %v370_v38 }
  0xde   : > { %v378_v31 = vpack.c.bf16 %v375_v40, %v374_v39 }
  0xe0   : > { %453 = vmatmul.bf16.vlgmr.msra.gmra.mxu0 %v378_v31 }
 0x15b   : > { %v459_v44 = vpop.f32.mrf.mxu2 }
 0x15c   : > { %v460_v47 = vadd.f32 %v883_v46, %v459_v44 }
 0x15d   : > { %v454_v45 = vpop.f32.mrf.mxu0 }
 0x15e   : > { %v455_v48 = vadd.f32 %v883_v46, %v454_v45  ;;  %v466_v53 = vmax.f32 %v460_v47, 0.0 }
 0x160   : > { %v464_v55 = vmax.f32 %v455_v48, 0.0 }
 0x163   : > { %v461_v49 = vpop.f32.mrf.mxu2 }
 0x164   : > { %v462_v50 = vadd.f32 %v883_v46, %v461_v49 }
 0x165   : > { %v456_v51 = vpop.f32.mrf.mxu0 }
 0x166   : > { %v457_v52 = vadd.f32 %v883_v46, %v456_v51  ;;  %v467_v54 = vmax.f32 %v462_v50, 0.0 }
 0x168   : > { %v465_v56 = vmax.f32 %v457_v52, 0.0  ;;  %v469_v57 = vpack.c.bf16 %v467_v54, %v466_v53 }
 0x16a   : > { %v468_v58 = vpack.c.bf16 %v465_v56, %v464_v55  ;;  %548 = vmatmul.bf16.vlgmr.msra.gmra.mxu3 %v469_v57 }
 0x16c   : > { %543 = vmatmul.bf16.vlgmr.msra.gmra.mxu1 %v468_v58 }
 0x1e9   : > { %v544_v60 = vpop.f32.mrf.mxu1 }
 0x1ea   : > { %v545_v61 = vadd.f32 %v884_v59, %v544_v60 }
 0x1ec   : > { %v554_v62 = vadd.f32 %v545_v61, %v1254_v1 }
 0x1ed   : > { %v549_v63 = vpop.f32.mrf.mxu3 }
 0x1ee   : > { %558 = vst [vmem:[%s265_s21] sm:$0xff] %v554_v62  ;;  %v550_v2 = vadd.f32 %v884_v59, %v549_v63 }
 0x1f0   : > { %v556_v5 = vadd.f32 %v550_v2, %v1252_v0 }
 0x1f1   : > { %v546_v6 = vpop.f32.mrf.mxu1 }
 0x1f2   : > { %v547_v7 = vadd.f32 %v884_v59, %v546_v6  ;;  %560 = vst [vmem:[%s265_s21 + $0x10] sm:$0xff] %v556_v5 }
 0x1f4   : > { %v555_v1 = vadd.f32 %v547_v7, %v1262_v4 }
 0x1f5   : > { %v551_v8 = vpop.f32.mrf.mxu3 }
 0x1f6   : > { %559 = vst [vmem:[%s265_s21 + $0x8] sm:$0xff] %v555_v1  ;;  %v552_v9 = vadd.f32 %v884_v59, %v551_v8 }
 0x1f8   : > { %v557_v10 = vadd.f32 %v552_v9, %v1260_v3 }
 0x1fa   : > { %561 = vst [vmem:[%s265_s21 + $0x18] sm:$0xff] %v557_v10 }
 0x1fb   : > { %1040 = shalt.err (!%p1037_p11)
}
 0x1fc   : > { %s1096_s8 = smov 128   ;;  %s1097_s14 = smov 8  }
 0x1fd   : > { %812 = dma.vmem_to_hbm [thread:$0]  (%p1206_p7), %s576_s13, 512, %s578_s24, %s563_s19, %s1096_s8, %s1096_s8, %s1097_s14  }
 0x1fe PF: > { %s592_s20 = sand.u32 1, %s1075_s15   ;;  %p1346_p12 = scmp.ge.s32.totalorder %s1087_s18, 2 }
 0x1ff   : > { %s593_s21 = scalar_lea.sflag [#allocation4], %s592_s20 }
 0x200   : > { %p829_p13 = pnand %p1346_p12, %p1158_p6 }
 0x202   : > { %p830_p0 = pneg %p829_p13 }
 0x204   : > { %1070 = dma.done.wait (%p830_p0), %s593_s21, 512  }
 0x205   : > { %1072 = vsyncadd (%p830_p0), %s593_s21, 4294966784  ;;  %p19_p3 = scmp.ge.s32.totalorder %s1192_s23, 4   ;;  %s1347_s15 = smov %s1079_s16 }
 0x206   : > { %s1348_s16 = smov %s1083_s17  ;;  %s1349_s17 = smov %s1202_s27 }
 0x207   : > { %s1350_s18 = smov %s1192_s23  ;;  %21 = sbr.rel (!%p19_p3) target bundleno = 7 (0x7), region = 93 }
 0x20c   :  { %599 = vsyncpa [#allocation3], 1 }
 0x20d   :  { %601 = vsyncpa [#allocation3 + $0x1], 1 }
 0x20e   :  { %602 = vsyncpa [#allocation6], 1 }
 0x20f   :  { %603 = vsyncpa [#allocation9], 1 }
 0x210   :  { %604 = vsyncpa [#allocation4], 1 }
 0x211   :  { %606 = vsyncpa [#allocation4 + $0x1], 1 }

</bundles_post_ra>
